<compile_context>
chip_gen: v7x
topology: tpu7x:2x2x1
jax: 0.10.0
libtpu: 0.0.40
codegen_flags: <defaults>
</compile_context>

<pallas_src>
import jax
import jax.numpy as jnp
from jax.experimental import pallas as pl
from jax.experimental.pallas import tpu as pltpu


# ----------------------------------------------------------------------------
# Glue: handle_feature_output (as in theia.utils / vfm), JAX version.
# ----------------------------------------------------------------------------
def handle_feature_output(x, feature_reduce_method=None):
    if feature_reduce_method is None or feature_reduce_method == "identity":
        return x
    elif feature_reduce_method == "mean_pooling":
        return jnp.mean(x, axis=1)
    elif feature_reduce_method == "max_pooling":
        return jnp.max(x, axis=1)
    elif feature_reduce_method == "flatten":
        return x.reshape(x.shape[0], -1)
    else:
        raise NotImplementedError(feature_reduce_method)


# ----------------------------------------------------------------------------
# Glue: im2col for the stride=patch "conv" patch embedding (NCHW input).
# ----------------------------------------------------------------------------
def extract_patches(x_nchw, patch):
    B, C, H, W = x_nchw.shape
    ph, pw = H // patch, W // patch
    x = x_nchw.reshape(B, C, ph, patch, pw, patch)
    x = x.transpose(0, 2, 4, 1, 3, 5)          # B, ph, pw, C, p, p  (conv weight order)
    return x.reshape(B, ph * pw, C * patch * patch)


def _round_up(x, m):
    return (x + m - 1) // m * m


# ----------------------------------------------------------------------------
# Trace-time fusion of all VFM patch-embed parameters into one weight slab
# plus one additive (T, D_sum) table.  Channel-wise concat is implicit.
# ----------------------------------------------------------------------------
def fuse_params(params):
    w_cat = jnp.concatenate([p["w"] for p in params], axis=1)      # (K, D_sum)
    b_cat = jnp.concatenate([p["b"] for p in params], axis=1)      # (1, D_sum)
    cls_cat = jnp.concatenate([p["cls"] for p in params], axis=1)  # (1, D_sum)
    pos_cat = jnp.concatenate([p["pos"] for p in params], axis=1)  # (T, D_sum)
    # Row 0: CLS token (+ its pos emb, NO bias — matches reference semantics).
    # Rows 1..N: bias + patch-token pos emb.
    add_cat = jnp.concatenate(
        [cls_cat + pos_cat[0:1, :], b_cat + pos_cat[1:, :]], axis=0)  # (T, D_sum)
    return w_cat, add_cat


# ----------------------------------------------------------------------------
# Pallas kernel: one wide matmul + one add + one lane-dense block store.
#   p_ref  : (tT, Kp)   zero-row-0-augmented patches (batch dim squeezed)
#   w_ref  : (Kp, tD)   fused weight tile
#   add_ref: (tT, tD)   fused bias/pos/CLS additive tile
#   o_ref  : (tT, tD)   output tile (batch dim squeezed)
# ----------------------------------------------------------------------------
def _fused_vfm_kernel(p_ref, w_ref, add_ref, o_ref):
    acc = jnp.dot(p_ref[...], w_ref[...], preferred_element_type=jnp.float32)
    o_ref[...] = (acc + add_ref[...]).astype(o_ref.dtype)


def concat_vfm_forward(x_nchw, params, patch_size, feature_reduce_method=None,
                       matmul_dtype=jnp.float32, token_tile=128, d_tile=512):
    """params: list of dicts {'w': (K, D_m), 'b': (1, D_m), 'cls': (1, D_m), 'pos': (T, D_m)}."""
    B, C, H, W = x_nchw.shape
    patches = extract_patches(x_nchw.astype(jnp.float32), patch_size)   # (B, N, K)
    N, K = patches.shape[1], patches.shape[2]
    T = N + 1
    D_sum = sum(int(p["w"].shape[1]) for p in params)

    w_cat, add_cat = fuse_params(params)                                # (K,Ds), (T,Ds)

    # ---- padding / tiling (everything (8,128)-aligned) ----
    Kp = _round_up(K, 128)
    Dp = _round_up(D_sum, 128)
    tD = 128
    for cand in (d_tile, 256, 128):
        if cand <= Dp and Dp % cand == 0:
            tD = cand
            break
    tT = min(token_tile, _round_up(T, 8))
    Tp = _round_up(T, tT)

    in_item = jnp.dtype(matmul_dtype).itemsize

    # Zero row 0 of the patch matrix: the CLS row gets 0 from the matmul and
    # cls+pos[0] from the additive table.  Padded rows/cols are zero and are
    # sliced away after the kernel.
    patches_aug = jnp.zeros((B, Tp, Kp), matmul_dtype)
    patches_aug = patches_aug.at[:, 1:T, :K].set(patches.astype(matmul_dtype))

    w_pad = jnp.zeros((Kp, Dp), matmul_dtype).at[:K, :D_sum].set(
        w_cat.astype(matmul_dtype))
    add_pad = jnp.zeros((Tp, Dp), jnp.float32).at[:T, :D_sum].set(add_cat)

    grid = (B, Tp // tT, Dp // tD)

    # VMEM budget: double-buffered tiles + headroom, capped for v7x's 64 MiB/TC.
    tile_bytes = (tT * Kp * in_item      # patches tile
                  + Kp * tD * in_item    # weight tile
                  + tT * tD * 4          # add tile
                  + tT * tD * 4)         # output tile
    vmem_limit = int(min(max(4 * tile_bytes, 16 * 2**20), 48 * 2**20))

    cost = pl.CostEstimate(
        flops=2 * B * Tp * Kp * Dp,
        transcendentals=0,
        bytes_accessed=(B * Tp * Kp * in_item + Kp * Dp * in_item
                        + Tp * Dp * 4 + B * Tp * Dp * 4),
    )

    feature_pad = pl.pallas_call(
        _fused_vfm_kernel,
        out_shape=jax.ShapeDtypeStruct((B, Tp, Dp), jnp.float32),
        grid=grid,
        in_specs=[
            pl.BlockSpec((pl.Squeezed(), tT, Kp), lambda b, t, d: (b, t, 0)),
            pl.BlockSpec((Kp, tD), lambda b, t, d: (0, d)),
            pl.BlockSpec((tT, tD), lambda b, t, d: (t, d)),
        ],
        out_specs=pl.BlockSpec((pl.Squeezed(), tT, tD), lambda b, t, d: (b, t, d)),
        compiler_params=pltpu.CompilerParams(
            dimension_semantics=("parallel", "parallel", "parallel"),
            vmem_limit_bytes=vmem_limit),
        cost_estimate=cost,
    )(patches_aug, w_pad, add_pad)

    feature = feature_pad[:, :T, :D_sum]
    return handle_feature_output(feature, feature_reduce_method)


# ----------------------------------------------------------------------------
# Deterministic synthetic parameter init for each "VFM encoder".
# ----------------------------------------------------------------------------
def init_vfm_params(key, model_dims, K, T):
    params = []
    for m, d in enumerate(model_dims):
        k_w, k_b, k_c, k_p = jax.random.split(jax.random.fold_in(key, m), 4)
        params.append({
            "w": 0.05 * jax.random.normal(k_w, (K, d), jnp.float32),
            "b": 0.05 * jax.random.normal(k_b, (1, d), jnp.float32),
            "cls": 0.05 * jax.random.normal(k_c, (1, d), jnp.float32),
            "pos": 0.05 * jax.random.normal(k_p, (T, d), jnp.float32),
        })
    return params


# ----------------------------------------------------------------------------
# Pure-JAX reference for correctness checking (per-model, then channel concat).
# ----------------------------------------------------------------------------
def reference_forward(x_nchw, params, patch_size, feature_reduce_method=None):
    patches = extract_patches(x_nchw.astype(jnp.float32), patch_size)  # (B, N, K)
    feats = []
    for p in params:
        tok = jnp.einsum("bnk,kd->bnd", patches, p["w"]) + p["b"][None]  # (B, N, D)
        tok = tok + p["pos"][None, 1:, :]
        cls = jnp.broadcast_to(p["cls"] + p["pos"][0:1, :],
                               (patches.shape[0], 1, p["w"].shape[1]))
        feats.append(jnp.concatenate([cls, tok], axis=1))
    feature = jnp.concatenate(feats, axis=-1)
    return handle_feature_output(feature, feature_reduce_method)


if __name__ == "__main__":
    # Small shapes: batch=2, 3-channel 16x16 "images", patch 4 -> 16 patch
    # tokens (+1 CLS), two synthetic VFM encoders with hidden dims 32 and 64
    # -> channel-concat dim 96.
    key = jax.random.PRNGKey(0)
    k_x, k_p = jax.random.split(key)

    B, C, H, W = 2, 3, 16, 16
    patch_size = 4
    N = (H // patch_size) * (W // patch_size)        # 16 patch tokens
    T = N + 1                                        # + CLS
    K = C * patch_size * patch_size                  # 48

    model_dims = (32, 64)
    feature_reduce_method = None                     # same default as the module

    x = jax.random.normal(k_x, (B, C, H, W), jnp.float32)
    params = init_vfm_params(k_p, model_dims, K, T)

    ref = reference_forward(x, params, patch_size, feature_reduce_method)

    # f32 path: exact parity with the reference.
    out = concat_vfm_forward(x, params, patch_size, feature_reduce_method,
                             matmul_dtype=jnp.float32)
    out = jax.block_until_ready(out)
    assert out.shape == (B, T, sum(model_dims)), out.shape
    assert jnp.allclose(out, ref, atol=1e-5, rtol=1e-5), "f32 mismatch vs reference"

    # bf16-operand path (f32 MXU accumulation): looser tolerance.
    out_bf16 = concat_vfm_forward(x, params, patch_size, feature_reduce_method,
                                  matmul_dtype=jnp.bfloat16)
    out_bf16 = jax.block_until_ready(out_bf16)
    assert jnp.allclose(out_bf16, ref, atol=5e-2, rtol=5e-2), "bf16 mismatch vs reference"

    print("KERNEL_OK")
</pallas_src>

<mosaic_0001>
module attributes {stable_mosaic.version = 11 : i64} {
  func.func @_fused_vfm_kernel(%arg0: i32, %arg1: i32, %arg2: i32, %arg3: memref<1x24x128xf32, #tpu.memory_space<vmem>>, %arg4: memref<128x128xf32, #tpu.memory_space<vmem>>, %arg5: memref<24x128xf32, #tpu.memory_space<vmem>>, %arg6: memref<1x24x128xf32, #tpu.memory_space<vmem>>) attributes {dimension_semantics = [#tpu.dimension_semantics<parallel>, #tpu.dimension_semantics<parallel>, #tpu.dimension_semantics<parallel>], iteration_bounds = array<i64: 2, 1, 1>, scalar_prefetch = 0 : i64, scratch_operands = 0 : i64, tpu.core_type = #tpu.core_type<tc>, window_params = [{transform_indices = @transform_0, window_bounds = array<i64: 1, 24, 128>}, {transform_indices = @transform_1, window_bounds = array<i64: 128, 128>}, {transform_indices = @transform_2, window_bounds = array<i64: 24, 128>}, {transform_indices = @transform_3, window_bounds = array<i64: 1, 24, 128>}]} {
    %c0 = arith.constant 0 : index
    %c0_0 = arith.constant 0 : index
    %c0_1 = arith.constant 0 : index
    %0 = vector.load %arg3[%c0, %c0_0, %c0_1] : memref<1x24x128xf32, #tpu.memory_space<vmem>>, vector<1x24x128xf32>
    %1 = vector.shape_cast %0 : vector<1x24x128xf32> to vector<24x128xf32>
    %c0_2 = arith.constant 0 : index
    %c0_3 = arith.constant 0 : index
    %2 = vector.load %arg4[%c0_2, %c0_3] : memref<128x128xf32, #tpu.memory_space<vmem>>, vector<128x128xf32>
    %cst = arith.constant dense<0.000000e+00> : vector<24x128xf32>
    %3 = tpu.matmul %1, %2, %cst {dimension_numbers = #tpu.dot_dimension_numbers<[1], [0], [0], [1], [0, 0, 1, 1], [], []>} : vector<24x128xf32>, vector<128x128xf32>, vector<24x128xf32> -> vector<24x128xf32>
    %c0_4 = arith.constant 0 : index
    %c0_5 = arith.constant 0 : index
    %4 = vector.load %arg5[%c0_4, %c0_5] : memref<24x128xf32, #tpu.memory_space<vmem>>, vector<24x128xf32>
    %5 = arith.addf %3, %4 : vector<24x128xf32>
    %c0_6 = arith.constant 0 : index
    %c0_7 = arith.constant 0 : index
    %c0_8 = arith.constant 0 : index
    %6 = vector.load %arg6[%c0_6, %c0_7, %c0_8] : memref<1x24x128xf32, #tpu.memory_space<vmem>>, vector<1x24x128xf32>
    %7 = vector.shape_cast %6 : vector<1x24x128xf32> to vector<24x128xf32>
    %8 = vector.shape_cast %5 : vector<24x128xf32> to vector<1x24x128xf32>
    tpu.vector_store %arg6[%c0_6, %c0_7, %c0_8], %8 {strides = array<i32>} : memref<1x24x128xf32, #tpu.memory_space<vmem>>, vector<1x24x128xf32>,
    return
  }
  func.func @transform_0(%arg0: i32, %arg1: i32, %arg2: i32) -> (i32, i32, i32) {
    %c0_i32 = arith.constant 0 : i32
    %c0_i32_0 = arith.constant 0 : i32
    return %arg0, %arg1, %c0_i32 : i32, i32, i32
  }
  func.func @transform_1(%arg0: i32, %arg1: i32, %arg2: i32) -> (i32, i32) {
    %c0_i32 = arith.constant 0 : i32
    %c0_i32_0 = arith.constant 0 : i32
    return %c0_i32, %arg2 : i32, i32
  }
  func.func @transform_2(%arg0: i32, %arg1: i32, %arg2: i32) -> (i32, i32) {
    %c0_i32 = arith.constant 0 : i32
    return %arg1, %arg2 : i32, i32
  }
  func.func @transform_3(%arg0: i32, %arg1: i32, %arg2: i32) -> (i32, i32, i32) {
    %c0_i32 = arith.constant 0 : i32
    return %arg0, %arg1, %arg2 : i32, i32, i32
  }
}

</mosaic_0001>

<bundles_post_ra>
// kernel: tpu_custom_call.1
= control target key start
LH: loop header
LB: loop body
LE: loop exit
PB: predicated region body
PF: predicated region fallthrough
CT: control target
= control target key end

     0   :  { %8 = vsyncpa [#allocation3], 0  ;;  %s1190_s0 = inlined_call_operand.hbm [shape: f32[2,24,128], index: 0, kind: input, shape index: {}]   ;;  %s1191_s1 = inlined_call_operand.hbm [shape: f32[128,128], index: 1, kind: input, shape index: {}]   ;;  %s1192_s2 = inlined_call_operand.hbm [shape: f32[24,128], index: 2, kind: input, shape index: {}]   ;;  %s1193_s3 = inlined_call_operand.hbm [shape: f32[2,24,128], index: 3, kind: output, shape index: {}]  }
   0x1   :  { %10 = vsyncpa [#allocation3 + $0x1], 0 }
   0x2   :  { %11 = vsyncpa [#allocation6], 0 }
   0x3   :  { %12 = vsyncpa [#allocation4], 0 }
   0x4   :  { %14 = vsyncpa [#allocation4 + $0x1], 0  ;;  %s916_s12 = smov 0   ;;  %s918_s13 = smov 0  }
   0x5   :  { %s920_s14 = smov 0   ;;  %s922_s15 = smov 0  }
   0x6   :  { %s924_s16 = smov 0   ;;  %s926_s17 = smov 0  }
   0x7 LB: > { %s504_s18 = sadd.s32 4294967295, %s883_s17   ;;  %s505_s19 = sadd.s32 4294967294, %s883_s17   ;;  %s883_s17 = sphi %s926_s17, %s20_s17   ;;  %s879_s16 = sphi %s924_s16, %s1215_s16   ;;  %s875_s15 = sphi %s922_s15, %s1214_s15   ;;  %s871_s14 = sphi %s920_s14, %s1213_s14   ;;  %s867_s13 = sphi %s918_s13, %s1212_s13   ;;  %s863_s12 = sphi %s916_s12, %s1211_s12  }
   0x8   : > { %p61_p0 = scmp.ne.s32.totalorder %s867_s13, %s863_s12  ;;  %p950_p1 = scmp.eq.s32.totalorder %s504_s18, 0 }
   0x9   : > { %p954_p2 = scmp.eq.s32.totalorder %s504_s18, 1  ;;  %p149_p3 = scmp.eq.s32.totalorder %s505_s19, 1 }
   0xa   : > { %s1198_s20 = scalar_select %p950_p1, 1, 0 }
   0xb   : > { %p960_p4 = por %p950_p1, %p61_p0  ;;  %p506_p5 = scmp.ge.s32.totalorder %s883_s17, 1 }
   0xc   : > { %p965_p6 = por %p149_p3, %p61_p0  ;;  %p156_p7 = scmp.lt.s32.totalorder %s883_s17, 3 }
   0xd   : > { %s1200_s22 = scalar_select %p960_p4, 1, 0 }
   0xe   : > { %s1201_s23 = scalar_select %p965_p6, 1, 0 }
   0xf   : > { %p970_p8 = pnand %p506_p5, %p156_p7  ;;  %s885_s25 = smov [#allocation5]  }
  0x10   : > { %s170_s26 = sshll.u32 %s885_s25, 4  ;;  %s886_s28 = smov [#allocation7]   ;;  %s974_s26 = int_to_ptr.vmem [resolvable:$true] %s170_s26 }
  0x11   : > { %p633_p9 = pneg %p970_p8  ;;  %s187_s29 = sshll.u32 %s886_s28, 4  ;;  %s985_s29 = int_to_ptr.vmem [resolvable:$true] %s187_s29 }
  0x12   : > { %s711_s5 = scalar_lea.hbm %s1191_s1, 2048 }
  0x13   : > { %p981_p11 = pnand %p633_p9, %p950_p1  ;;  %p712_p12 = scmp.ne.s32.totalorder %s1191_s1, %s711_s5 }
  0x14   : > { %p718_p5 = scmp.lt.u32.totalorder %s711_s5, %s1191_s1 }
  0x15   : > { %p713_p13 = pneg %p981_p11 }
  0x17   : > { %p714_p0 = pnand %p713_p13, %p712_p12 }
  0x19   : > { %p715_p3 = pneg %p714_p0 }
  0x1b   : > { %p720_p7 = pnand %p718_p5, %p715_p3 }
  0x1d   : > { %723 = shalt.err (!%p720_p7)
}
  0x1e   : > { %s724_s10 = scalar_lea.vmem %s974_s26, 2048  ;;  %p732_p1 = scmp.lt.s32.totalorder %s974_s26, %s974_s26 }
  0x1f   : > { %p725_p9 = scmp.ne.s32.totalorder %s974_s26, %s724_s10  ;;  %p733_p12 = scmp.lt.s32.totalorder %s724_s10, %s724_s10 }
  0x21   : > { %p727_p10 = pnand %p725_p9, %p713_p13  ;;  %p734_p0 = por %p733_p12, %p732_p1 }
  0x23   : > { %p728_p6 = pneg %p727_p10 }
  0x25   : > { %p735_p4 = pnand %p734_p0, %p728_p6 }
  0x27   : > { %738 = shalt.err (!%p735_p4)
}
  0x28   : > { %s887_s11 = smov 128   ;;  %s888_s18 = smov 8  }
  0x29   : > { %636 = dma.hbm_to_vmem [thread:$0]  (!%p981_p11), %s1191_s1, 2048, %s974_s26, [#allocation6], %s887_s11, %s887_s11, %s888_s18  }
  0x2a   : > { %s739_s4 = scalar_lea.hbm %s1192_s2, 384 }
  0x2b   : > { %p740_p1 = scmp.ne.s32.totalorder %s1192_s2, %s739_s4  ;;  %p746_p10 = scmp.lt.u32.totalorder %s739_s4, %s1192_s2 }
  0x2d   : > { %p742_p4 = pnand %p740_p1, %p713_p13 }
  0x2f   : > { %p743_p6 = pneg %p742_p4 }
  0x31   : > { %p748_p3 = pnand %p746_p10, %p743_p6 }
  0x33   : > { %751 = shalt.err (!%p748_p3)
}
  0x34   : > { %s752_s26 = scalar_lea.vmem %s985_s29, 384  ;;  %p760_p12 = scmp.lt.s32.totalorder %s985_s29, %s985_s29 }
  0x35   : > { %p753_p5 = scmp.ne.s32.totalorder %s985_s29, %s752_s26  ;;  %p761_p0 = scmp.lt.s32.totalorder %s752_s26, %s752_s26 }
  0x37   : > { %p755_p7 = pnand %p753_p5, %p713_p13  ;;  %p762_p1 = por %p761_p0, %p760_p12 }
  0x39   : > { %p756_p9 = pneg %p755_p7 }
  0x3b   : > { %p763_p4 = pnand %p762_p1, %p756_p9 }
  0x3d   : > { %766 = shalt.err (!%p763_p4)
}
  0x3e   : > { %639 = dma.hbm_to_vmem [thread:$0]  (!%p981_p11), %s1192_s2, 384, %s985_s29, [#allocation6], %s887_s11, %s887_s11, %s888_s18  }
  0x3f   : > { %s39_s27 = sadd.s32 1, %s879_s16  ;;  %s48_s19 = sadd.s32 1, %s871_s14 }
  0x40   : > { %p41_p13 = scmp.ge.s32.totalorder %s39_s27, 2  ;;  %p55_p6 = scmp.ne.s32.totalorder %s871_s14, %s867_s13 }
  0x41   : > { %p56_p10 = scmp.eq.s32.totalorder %s883_s17, 0  ;;  %p650_p3 = scmp.lt.s32.totalorder %s883_s17, 2 }
  0x42   : > { %s1217_s27 = smov (%p41_p13, %s39_s27), 0  ;;  %p1055_p7 = por %p954_p2, %p55_p6 }
  0x43   : > { %p57_p5 = por %p56_p10, %p55_p6  ;;  %s43_s28 = ssub.s32 %s879_s16, %s1217_s27 }
  0x44   : > { %s1204_s25 = scalar_select %p1055_p7, 1, 0 }
  0x45   : > { %s201_s30 = sand.u32 1, %s871_s14   ;;  %p46_p9 = scmp.eq.s32.totalorder %s43_s28, 0 }
  0x46   : > { %s617_s29 = smul.u32 24, %s201_s30  ;;  %p1062_p11 = pnand %p650_p3, %p57_p5 }
  0x47   : > { %s1067_s5 = scalar_select %p46_p9, %s871_s14, %s48_s19  }
  0x48   : > { %s618_s6 = smul.u32 384, %s879_s16  ;;  %s205_s7 = scalar_lea.vmem [#allocation2], %s617_s29 }
  0x49   : > { %s214_s8 = sshll.u32 %s205_s7, 4  ;;  %s1077_s10 = scalar_lea.sflag [#allocation3], %s201_s30  ;;  %s1075_s8 = int_to_ptr.vmem [resolvable:$true] %s214_s8 }
  0x4a   : > { %s1073_s9 = scalar_lea.hbm %s1190_s0, %s618_s6  ;;  %p769_p12 = pneg %p1062_p11 }
  0x4b   : > { %s767_s28 = scalar_lea.hbm %s1073_s9, 384  ;;  %s772_s6 = scalar_lea.hbm %s1190_s0, 768 }
  0x4c   : > { %p768_p2 = scmp.ne.s32.totalorder %s1073_s9, %s767_s28  ;;  %p773_p4 = scmp.lt.u32.totalorder %s1073_s9, %s1190_s0 }
  0x4d   : > { %p774_p13 = scmp.lt.u32.totalorder %s772_s6, %s767_s28  ;;  %p776_p10 = scmp.lt.u32.totalorder %s767_s28, %s1073_s9 }
  0x4e   : > { %p770_p0 = pnand %p769_p12, %p768_p2 }
  0x4f   : > { %p775_p6 = por %p774_p13, %p773_p4 }
  0x50   : > { %p771_p1 = pneg %p770_p0 }
  0x51   : > { %p777_p3 = por %p776_p10, %p775_p6 }
  0x53   : > { %p778_p5 = pnand %p777_p3, %p771_p1 }
  0x55   : > { %781 = shalt.err (!%p778_p5)
}
  0x56   : > { %s782_s30 = scalar_lea.vmem %s1075_s8, 384  ;;  %s889_s26 = smov [#allocation2]  }
  0x57   : > { %p783_p9 = scmp.ne.s32.totalorder %s1075_s8, %s782_s30  ;;  %s787_s19 = sshll.u32 %s889_s26, 4  ;;  %s788_s19 = int_to_ptr.vmem [resolvable:$false] %s787_s19 }
  0x58   : > { %s789_s29 = scalar_lea.vmem %s788_s19, 768  ;;  %p790_p7 = scmp.lt.s32.totalorder %s1075_s8, %s788_s19 }
  0x59   : > { %p785_p2 = pnand %p783_p9, %p769_p12  ;;  %p791_p4 = scmp.lt.s32.totalorder %s789_s29, %s782_s30 }
  0x5b   : > { %p786_p0 = pneg %p785_p2  ;;  %p792_p13 = por %p791_p4, %p790_p7 }
  0x5d   : > { %p793_p6 = pnand %p792_p13, %p786_p0 }
  0x5f   : > { %796 = shalt.err (!%p793_p6)
}
  0x60   : > { %643 = dma.hbm_to_vmem [thread:$0]  (!%p1062_p11), %s1073_s9, 384, %s1075_s8, %s1077_s10, %s887_s11, %s887_s11, %s888_s18  }
  0x61   : > { %226 = sbr.rel (%p970_p8) target bundleno = 376 (0x178), region = 32  ;;  %s1111_s28 = sand.u32 (!%p970_p8), 1, %s867_s13  }
  0x62   : > { %s619_s6 = smul.u32 (!%p970_p8), 24, %s1111_s28  ;;  %s229_s7 = scalar_lea.sflag (!%p970_p8), [#allocation3], %s1111_s28 }
  0x63   : > { %p1206_p7 = scmp.ne.s32.totalorder (!%p970_p8), %s1200_s22, 0 }
  0x64   : > { %s1117_s4 = scalar_lea.vmem (!%p970_p8), [#allocation2], %s619_s6 }
  0x68   : > { %850 = dma.done.wait (%p1206_p7), %s229_s7, 384  }
  0x69   : > { %852 = vsyncadd (%p1206_p7), %s229_s7, 4294966912  ;;  %p1207_p11 = scmp.ne.s32.totalorder %s1198_s20, 0 }
  0x6b   : > { %854 = dma.done.wait (%p1207_p11), [#allocation6], 2432  }
  0x6c   : > { %856 = vsyncadd (%p1207_p11), [#allocation6], 4294964864  ;;  %v890_v0 = vmov 0.0|0.0   ;;  %vm891_vm0 = vmmov 0   ;;  %v892_v1 = vmov 0.0   ;;  %v269_v2 = vld [vmem:[#allocation5] sm:$0xff] }
  0x6d   : > { %601 = vmatprep.subr.bf16.mxu1 %v890_v0  ;;  %577 = vmatprep.subr.bf16.mxu0 %v890_v0  ;;  %v270_v3 = vld [vmem:[#allocation5 + $0x8] sm:$0xff]  ;;  %v271_v4 = vld [vmem:[#allocation5 + $0x10] sm:$0xff]  ;;  %v272_v6 = vld [vmem:[#allocation5 + $0x18] sm:$0xff]  ;;  %s262_s20 = scalar_lea.vmem [#allocation8], %s619_s6  ;;  %s620_s24 = smul.u32 384, %s875_s15 }
  0x6e   : > { %571 = vmatprep.mubr.msk.f32.mxu1 %vm891_vm0, %v892_v1  ;;  %568 = vmatprep.mubr.msk.f32.mxu0 %vm891_vm0, %v892_v1  ;;  %v578_v5 = vpack.c.bf16 %v270_v3, %v269_v2  ;;  %v581_v7 = vpack.c.bf16 %v272_v6, %v271_v4  ;;  %v273_v8 = vld [vmem:[#allocation5 + $0x20] sm:$0xff]  ;;  %v274_v9 = vld [vmem:[#allocation5 + $0x28] sm:$0xff]  ;;  %v275_v11 = vld [vmem:[#allocation5 + $0x30] sm:$0xff]  ;;  %s388_s22 = sshll.u32 %s262_s20, 4  ;;  %s372_s15 = scalar_lea.sflag [#allocation4], %s1111_s28  ;;  %s1136_s22 = int_to_ptr.vmem [resolvable:$true] %s388_s22 }
  0x6f   : > { %v584_v10 = vpack.c.bf16 %v274_v9, %v273_v8  ;;  %v276_v12 = vld [vmem:[#allocation5 + $0x38] sm:$0xff]  ;;  %v277_v14 = vld [vmem:[#allocation5 + $0x40] sm:$0xff]  ;;  %v278_v15 = vld [vmem:[#allocation5 + $0x48] sm:$0xff]  ;;  %s1141_s8 = scalar_lea.hbm %s1193_s3, %s620_s24  ;;  %s797_s9 = scalar_lea.vmem %s1136_s22, 384 }
  0x70   : > { %609 = vmatpush3.bf16.msra.mxu1 %v578_v5  ;;  %579 = vmatpush3.bf16.msra.mxu0 %v578_v5  ;;  %v587_v13 = vpack.c.bf16 %v276_v12, %v275_v11  ;;  %v590_v16 = vpack.c.bf16 %v278_v15, %v277_v14  ;;  %v279_v17 = vld [vmem:[#allocation5 + $0x50] sm:$0xff]  ;;  %v280_v18 = vld [vmem:[#allocation5 + $0x58] sm:$0xff]  ;;  %v281_v20 = vld [vmem:[#allocation5 + $0x60] sm:$0xff]  ;;  %p798_p8 = scmp.ne.s32.totalorder %s1136_s22, %s797_s9  ;;  %p1208_p12 = scmp.ne.s32.totalorder %s1204_s25, 0 }
  0x71   : > { %602 = vmatprep.subr.bf16.mxu1 %v890_v0  ;;  %580 = vmatprep.subr.bf16.mxu0 %v890_v0  ;;  %v593_v19 = vpack.c.bf16 %v280_v18, %v279_v17  ;;  %v282_v21 = vld [vmem:[#allocation5 + $0x68] sm:$0xff]  ;;  %v283_v23 = vld [vmem:[#allocation5 + $0x70] sm:$0xff]  ;;  %v284_v24 = vld [vmem:[#allocation5 + $0x78] sm:$0xff]  ;;  %s893_s10 = smov [#allocation8]  }
  0x72   : > { %v596_v22 = vpack.c.bf16 %v282_v21, %v281_v20  ;;  %v599_v25 = vpack.c.bf16 %v284_v24, %v283_v23  ;;  %v267_v26 = vld [vmem:[%s1117_s4 + $0x8] sm:$0xff]  ;;  %v266_v27 = vld [vmem:[%s1117_s4] sm:$0xff]  ;;  %v268_v28 = vld [vmem:[%s1117_s4 + $0x10] sm:$0xff]  ;;  %p799_p1 = pnand %p798_p8, %p1208_p12  ;;  %s801_s21 = sshll.u32 %s893_s10, 4  ;;  %s802_s21 = int_to_ptr.vmem [resolvable:$false] %s801_s21 }
  0x73   : > { %v286_v29 = vld [vmem:[#allocation7 + $0x8] sm:$0xff]  ;;  %v285_v30 = vld [vmem:[#allocation7] sm:$0xff]  ;;  %v287_v37 = vld [vmem:[#allocation7 + $0x10] sm:$0xff]  ;;  %s803_s30 = scalar_lea.vmem %s802_s21, 768  ;;  %p804_p3 = scmp.lt.s32.totalorder %s1136_s22, %s802_s21 }
  0x74   : > { %610 = vmatpush3.bf16.msra.mxu1 %v581_v7  ;;  %582 = vmatpush3.bf16.msra.mxu0 %v581_v7  ;;  %p800_p10 = pneg %p799_p1  ;;  %p805_p5 = scmp.lt.s32.totalorder %s803_s30, %s797_s9 }
  0x75   : > { %603 = vmatprep.subr.bf16.mxu1 %v890_v0  ;;  %583 = vmatprep.subr.bf16.mxu0 %v890_v0 }
  0x76   : > { %p806_p9 = por %p805_p5, %p804_p3 }
  0x78   : > { %611 = vmatpush3.bf16.msra.mxu1 %v584_v10  ;;  %585 = vmatpush3.bf16.msra.mxu0 %v584_v10  ;;  %p807_p2 = pnand %p806_p9, %p800_p10 }
  0x79   : > { %604 = vmatprep.subr.bf16.mxu1 %v890_v0  ;;  %586 = vmatprep.subr.bf16.mxu0 %v890_v0 }
  0x7c   : > { %612 = vmatpush3.bf16.msra.mxu1 %v587_v13  ;;  %588 = vmatpush3.bf16.msra.mxu0 %v587_v13 }
  0x7d   : > { %605 = vmatprep.subr.bf16.mxu1 %v890_v0  ;;  %589 = vmatprep.subr.bf16.mxu0 %v890_v0 }
  0x80   : > { %613 = vmatpush3.bf16.msra.mxu1 %v590_v16  ;;  %591 = vmatpush3.bf16.msra.mxu0 %v590_v16 }
  0x81   : > { %606 = vmatprep.subr.bf16.mxu1 %v890_v0  ;;  %592 = vmatprep.subr.bf16.mxu0 %v890_v0 }
  0x84   : > { %614 = vmatpush3.bf16.msra.mxu1 %v593_v19  ;;  %594 = vmatpush3.bf16.msra.mxu0 %v593_v19 }
  0x85   : > { %607 = vmatprep.subr.bf16.mxu1 %v890_v0  ;;  %595 = vmatprep.subr.bf16.mxu0 %v890_v0 }
  0x88   : > { %615 = vmatpush3.bf16.msra.mxu1 %v596_v22  ;;  %597 = vmatpush3.bf16.msra.mxu0 %v596_v22 }
  0x89   : > { %608 = vmatprep.subr.bf16.mxu1 %v890_v0  ;;  %598 = vmatprep.subr.bf16.mxu0 %v890_v0 }
  0x8c   : > { %616 = vmatpush3.bf16.msra.mxu1 %v599_v25  ;;  %600 = vmatpush3.bf16.msra.mxu0 %v599_v25 }
  0x8f   : > { %572 = vmatmul.mubr.f32.vlgmr.msra.gmra.mrb[0].mxu1 %v267_v26  ;;  %569 = vmatmul.mubr.f32.vlgmr.msra.gmra.mrb[0].mxu0 %v266_v27 }
  0x90   : > { %574 = vmatprep.mubr.msk.f32.mxu1 %vm891_vm0, %v892_v1 }
  0x93   : > { %575 = vmatmul.mubr.f32.gmra.mrb[2].mxu1 %v268_v28 }
 0x162   : > { %v359_v31 = vpop.f32.mrb[0].mxu1  ;;  %v354_v32 = vpop.f32.mrb[0].mxu0 }
 0x163   : > { %v360_v33 = vadd.f32 %v359_v31, %v286_v29  ;;  %v573_v34 = vpop.f32.mrb[1].mxu1  ;;  %v355_v35 = vadd.f32 %v354_v32, %v285_v30  ;;  %v570_v36 = vpop.f32.mrb[1].mxu0 }
 0x165   : > { %369 = vst [vmem:[%s262_s20 + $0x8] sm:$0xff] %v360_v33  ;;  %368 = vst [vmem:[%s262_s20] sm:$0xff] %v355_v35 }
 0x166   : > { %v364_v38 = vpop.f32.mrb[2].mxu1 }
 0x167   : > { %v365_v39 = vadd.f32 %v364_v38, %v287_v37  ;;  %v576_v40 = vpop.f32.mrb[3].mxu1 }
 0x169   : > { %370 = vst [vmem:[%s262_s20 + $0x10] sm:$0xff] %v365_v39 }
 0x16a   : > { %810 = shalt.err (!%p807_p2)
}
 0x16b   : > { %s811_s26 = scalar_lea.hbm %s1141_s8, 384  ;;  %s815_s6 = scalar_lea.hbm %s1193_s3, 768 }
 0x16c   : > { %p812_p0 = scmp.ne.s32.totalorder %s1141_s8, %s811_s26  ;;  %p816_p6 = scmp.lt.u32.totalorder %s1141_s8, %s1193_s3 }
 0x16d   : > { %p817_p7 = scmp.lt.u32.totalorder %s815_s6, %s811_s26  ;;  %p819_p8 = scmp.lt.u32.totalorder %s811_s26, %s1141_s8 }
 0x16e   : > { %p813_p4 = pnand %p812_p0, %p1208_p12 }
 0x16f   : > { %p818_p11 = por %p817_p7, %p816_p6 }
 0x170   : > { %p814_p13 = pneg %p813_p4 }
 0x171   : > { %p820_p1 = por %p819_p8, %p818_p11 }
 0x173   : > { %p821_p10 = pnand %p820_p1, %p814_p13 }
 0x175   : > { %824 = shalt.err (!%p821_p10)
}
 0x176   : > { %s894_s20 = smov 128   ;;  %s895_s24 = smov 8  }
 0x177   : > { %631 = dma.vmem_to_hbm [thread:$0]  (%p1208_p12), %s1136_s22, 384, %s1141_s8, %s372_s15, %s894_s20, %s894_s20, %s895_s24  }
 0x178 PF: > { %s403_s11 = sand.u32 1, %s863_s12   ;;  %p1209_p3 = scmp.ne.s32.totalorder %s1201_s23, 0 }
 0x179   : > { %p1210_p5 = scmp.ge.s32.totalorder %s883_s17, 2  ;;  %s404_s18 = scalar_lea.sflag [#allocation4], %s403_s11 }
 0x17b   : > { %p645_p9 = pnand %p1210_p5, %p1209_p3 }
 0x17d   : > { %858 = dma.done.wait (!%p645_p9), %s404_s18, 384  }
 0x17e   : > { %860 = vsyncadd (!%p645_p9), %s404_s18, 4294966912  ;;  %s20_s17 = sadd.s32 1, %s883_s17   ;;  %s1211_s12 = smov %s867_s13 }
 0x17f   : > { %p17_p2 = scmp.ge.s32.totalorder %s20_s17, 4   ;;  %s1212_s13 = smov %s871_s14 }
 0x180   : > { %s1213_s14 = smov %s1067_s5  ;;  %s1214_s15 = smov %s879_s16 }
 0x181   : > { %s1215_s16 = smov %s1217_s27  ;;  %19 = sbr.rel (!%p17_p2) target bundleno = 7 (0x7), region = 87 }
 0x188   :  { %409 = vsyncpa [#allocation3], 1 }
 0x189   :  { %411 = vsyncpa [#allocation3 + $0x1], 1 }
 0x18a   :  { %412 = vsyncpa [#allocation6], 1 }
 0x18b   :  { %413 = vsyncpa [#allocation4], 1 }
 0x18c   :  { %415 = vsyncpa [#allocation4 + $0x1], 1 }

</bundles_post_ra>
